<compile_context>
chip_gen: v7x
topology: tpu7x:2x2x1
jax: 0.10.0
libtpu: 0.0.40
codegen_flags: <defaults>
</compile_context>

<pallas_src>
import functools

import jax
import jax.numpy as jnp
from jax.experimental import pallas as pl
from jax.experimental.pallas import tpu as pltpu


def _round_up(x, m):
    return ((x + m - 1) // m) * m


@functools.lru_cache(maxsize=None)
def _device_budgets():
    """(vmem_limit_bytes, per-step tile budget bytes), generation aware."""
    vmem_cap = None
    try:
        vmem_cap = pltpu.get_tpu_info().vmem_capacity_bytes
    except Exception:
        vmem_cap = None
    if vmem_cap is None or vmem_cap <= 64 * 1024 * 1024:
        # v7x-class (64 MiB/TC) or unknown: leave headroom for Mosaic's own
        # scratch and the double buffers; be conservative when unknown.
        return 48 * 1024 * 1024, 10 * 1024 * 1024
    # v5e / v6e: 128 MiB physical VMEM.
    return 100 * 1024 * 1024, 28 * 1024 * 1024


def _choose_row_tile(h, w, wr, cin, cout, itemsize, budget_bytes):
    """Largest divisor of H whose *real* in-kernel footprint fits the budget.

    Only tiles whose output block minor dim (TH*W) is a multiple of 128 lanes
    (or covers the full H*W) are considered, so stores stay unmasked/legal.
    Prefers >= 2 row tiles per image (pipeline depth) and an even tile count
    (balanced 2-TensorCore split on v7x when B is small).
    """
    lanes = 128
    divisors = [d for d in range(1, h + 1) if h % d == 0]
    candidates = [d for d in divisors if (d * w) % lanes == 0 or d == h]

    def footprint(th):
        p = (th + 2) * wr
        return (2 * cin * p * itemsize            # double-buffered input scratch
                + 2 * cin * p * itemsize          # live shifted-tap temporaries
                + 3 * cout * p * 4                # f32 accumulator + SiLU temps
                + cout * p * itemsize             # post-cast copy before crop
                + 3 * cout * th * w * itemsize    # out block (x2 bufs) + compacted tile
                + 2 * 9 * cout * cin * itemsize   # weights (x2 bufs)
                + cout * 4)                       # bias

    fitting = [d for d in candidates if footprint(d) <= budget_bytes]
    if not fitting:
        # Deterministic shrink: smallest lane-valid tile.  (Extreme Cin/Cout
        # would additionally need channel tiling — TODO(synk).)
        return min(candidates)
    best = [d for d in fitting if (h // d) >= 2 and (h // d) % 2 == 0]
    if not best:
        best = [d for d in fitting if (h // d) >= 2]
    if not best:
        best = fitting
    return max(best)


def _conv3x3_silu_kernel(x_hbm, w_ref, b_ref, o_ref, xbuf, sem, *,
                         th, w_out, wr, nt_in):
    """One (batch, outer-tile, inner-tile) grid step.

    x_hbm: (B, Cin, (H+2)*Wr)  padded, per-row lane-padded, flattened (HBM)
    w_ref: (9, Cout, Cin)      weights, tap index = 3*kh + kw
    b_ref: (Cout, 1) f32       bias
    o_ref: (1, Cout, TH*W)     lane-dense output tile
    xbuf : (2, Cin, P)         double-buffered activation window, P=(TH+2)*Wr
    sem  : DMA semaphores (2,)
    """
    b = pl.program_id(0)
    to = pl.program_id(1)
    ti = pl.program_id(2)
    t = to * nt_in + ti               # global row-tile index
    p = (th + 2) * wr

    def fetch(tile_idx, slot):
        start = pl.multiple_of(tile_idx * (th * wr), 128)
        pltpu.make_async_copy(
            x_hbm.at[b, :, pl.ds(start, p)],
            xbuf.at[slot],
            sem.at[slot],
        ).start()

    # Prologue of each (b, to) chunk: fetch its first tile synchronously.
    @pl.when(ti == 0)
    def _():
        fetch(t, 0)

    slot = ti % 2
    cur_start = pl.multiple_of(t * (th * wr), 128)
    pltpu.make_async_copy(
        x_hbm.at[b, :, pl.ds(cur_start, p)],
        xbuf.at[slot],
        sem.at[slot],
    ).wait()

    # Prefetch the next tile of this chunk; overlaps with the compute below.
    # The inner grid axis is "arbitrary" (sequential), so this is safe.
    @pl.when(ti + 1 < nt_in)
    def _():
        fetch(t + 1, 1 - slot)

    x = xbuf[slot]                    # (Cin, P): sublane=Cin, lane=flat pixels

    # im2col via XLU rolls: tap (kh,kw) needs x[f + kh*Wr + kw].  kh shifts are
    # multiples of Wr (a multiple of 128) => vreg-granular; kw shifts are 1/2.
    # Wrap-around safety: max valid output position f0 = (th-1)*wr + (w_out-1),
    # so the largest index read is f0 + 2*wr + 2 <= (th+2)*wr - 1 = P-1 (since
    # w_out + 2 <= wr); wrapped lanes only land at positions the crop discards.
    # Nine small MXU matmuls accumulated in f32: no 9x im2col buffer and no
    # sublane-misaligned concatenate when Cin % 8 != 0.
    acc = None
    for kh in range(3):
        xh = x if kh == 0 else pltpu.roll(x, shift=p - kh * wr, axis=1)
        for kw in range(3):
            xs = xh if kw == 0 else pltpu.roll(xh, shift=p - kw, axis=1)
            tap = 3 * kh + kw
            contrib = jnp.dot(w_ref[tap], xs,
                              preferred_element_type=jnp.float32)  # (Cout, P)
            acc = contrib if acc is None else acc + contrib

    acc = acc + b_ref[...]            # f32 bias
    y = acc * jax.nn.sigmoid(acc)     # SiLU; exp/recip on the EUP slot
    y = y.astype(o_ref.dtype)         # cast BEFORE the crop (less data to move)

    # Crop: drop the 2 halo rows and the per-row lane pad.  Every row starts at
    # a lane offset that is a multiple of 128, so this is an aligned slice +
    # lane-aligned concat (vreg-granular whenever W % 128 == 0).
    rows = [y[:, r * wr: r * wr + w_out] for r in range(th)]
    o_ref[0] = jnp.concatenate(rows, axis=1)          # (Cout, TH*W)


@jax.jit
def autoshape_forward(x_nchw, weight_oihw, bias):
    """Pallas equivalent of autoShape.forward for a Tensor input.

    x_nchw:      (B, Cin, H, W)
    weight_oihw: (Cout, Cin, 3, 3)   (PyTorch conv layout)
    bias:        (Cout,)  float32
    returns:     (B, Cout, H, W)
    """
    # autoShape: x.to(p.device).type_as(p)  (bf16 weights => bf16 MXU operands)
    dtype = weight_oihw.dtype
    x = x_nchw.astype(dtype)

    B, Cin, H, W = x.shape
    Cout = weight_oihw.shape[0]
    itemsize = jnp.dtype(dtype).itemsize
    Wr = _round_up(W + 2, 128)            # per-row lane-padded width

    vmem_limit, tile_budget = _device_budgets()
    TH = _choose_row_tile(H, W, Wr, Cin, Cout, itemsize, tile_budget)
    n_tiles = H // TH
    # Outer/inner split of the row-tile axis: outer is "parallel" so v7x's two
    # TensorCores stay balanced even at B=1; inner is "arbitrary" (sequential)
    # so the manual prefetch-next pipeline is order-safe.
    NT_OUT = 2 if (n_tiles % 2 == 0 and n_tiles >= 4) else 1
    NT_IN = n_tiles // NT_OUT
    P = (TH + 2) * Wr

    # Single pad pass: 1-pixel zero border + lane pad each row to Wr, then a
    # free (metadata-only) flatten of the trailing two dims.  No halo-row
    # duplication and no extra HBM round trip.
    x_pad = jnp.pad(x, ((0, 0), (0, 0), (1, 1), (1, Wr - W - 1)))
    x_flat = x_pad.reshape(B, Cin, (H + 2) * Wr)

    # (9, Cout, Cin): tap-major weights, tap = 3*kh + kw.
    w_taps = jnp.transpose(weight_oihw, (2, 3, 0, 1)).reshape(9, Cout, Cin)
    w_taps = w_taps.astype(dtype)
    b2d = bias.reshape(Cout, 1).astype(jnp.float32)   # bias stays f32

    kernel = functools.partial(_conv3x3_silu_kernel,
                               th=TH, w_out=W, wr=Wr, nt_in=NT_IN)

    cost = pl.CostEstimate(
        flops=2 * B * H * W * 9 * Cin * Cout,
        transcendentals=B * H * W * Cout,
        bytes_accessed=(x_flat.size + w_taps.size) * itemsize
        + b2d.size * 4 + B * Cout * H * W * itemsize,
    )

    out_flat = pl.pallas_call(
        kernel,
        out_shape=jax.ShapeDtypeStruct((B, Cout, H * W), dtype),
        grid=(B, NT_OUT, NT_IN),
        in_specs=[
            pl.BlockSpec(memory_space=pl.ANY),        # activation stays in HBM
            pl.BlockSpec((9, Cout, Cin), lambda b, to, ti: (0, 0, 0)),
            pl.BlockSpec((Cout, 1), lambda b, to, ti: (0, 0)),
        ],
        out_specs=pl.BlockSpec((1, Cout, TH * W),
                               lambda b, to, ti: (b, 0, to * NT_IN + ti)),
        scratch_shapes=[
            pltpu.VMEM((2, Cin, P), dtype),           # double-buffered window
            pltpu.SemaphoreType.DMA((2,)),
        ],
        compiler_params=pltpu.CompilerParams(
            dimension_semantics=("parallel", "parallel", "arbitrary"),
            vmem_limit_bytes=vmem_limit,
        ),
        cost_estimate=cost,
    )(x_flat, w_taps, b2d)

    # (B, Cout, H*W) -> NCHW: a free reshape (no transpose needed).
    return out_flat.reshape(B, Cout, H, W)


def _reference_forward(x_nchw, weight_oihw, bias):
    """Pure-JAX reference (lax conv) for correctness check."""
    x = x_nchw.astype(weight_oihw.dtype)
    y = jax.lax.conv_general_dilated(
        x, weight_oihw,
        window_strides=(1, 1), padding="SAME",
        dimension_numbers=("NCHW", "OIHW", "NCHW"),
        precision=jax.lax.Precision.HIGHEST,
    )
    y = y + bias.reshape(1, -1, 1, 1)
    return y * jax.nn.sigmoid(y)


if __name__ == "__main__":
    key = jax.random.PRNGKey(0)
    k_x, k_w, k_b = jax.random.split(key, 3)

    B, Cin, H, W = 2, 4, 16, 16
    Cout = 8

    x = jax.random.uniform(k_x, (B, Cin, H, W), dtype=jnp.float32)
    weight = jax.random.normal(k_w, (Cout, Cin, 3, 3), dtype=jnp.float32) * 0.1
    bias = jax.random.normal(k_b, (Cout,), dtype=jnp.float32) * 0.1

    out = jax.block_until_ready(autoshape_forward(x, weight, bias))
    ref = _reference_forward(x, weight, bias)

    assert out.shape == (B, Cout, H, W), out.shape
    max_err = float(jnp.max(jnp.abs(out - ref)))
    assert jnp.allclose(out, ref, atol=1e-4, rtol=1e-4), max_err

    print("KERNEL_OK")
</pallas_src>

<mosaic_0001>
module attributes {stable_mosaic.version = 11 : i64} {
  func.func @_conv3x3_silu_kernel(%arg0: i32, %arg1: i32, %arg2: i32, %arg3: memref<2x4x2304xf32, #tpu.memory_space<any>>, %arg4: memref<9x8x4xf32, #tpu.memory_space<vmem>>, %arg5: memref<8x1xf32, #tpu.memory_space<vmem>>, %arg6: memref<1x8x128xf32, #tpu.memory_space<vmem>>, %arg7: memref<2x4x1280xf32, #tpu.memory_space<vmem>>, %arg8: memref<2x!tpu.dma_semaphore, #tpu.memory_space<semaphore_mem>>) attributes {dimension_semantics = [#tpu.dimension_semantics<parallel>, #tpu.dimension_semantics<parallel>, #tpu.dimension_semantics<arbitrary>], iteration_bounds = array<i64: 2, 1, 2>, scalar_prefetch = 0 : i64, scratch_operands = 2 : i64, tpu.core_type = #tpu.core_type<tc>, window_params = [{}, {pipeline_mode = #tpu.pipeline_mode<synchronous>, transform_indices = @transform_1, window_bounds = array<i64: 9, 8, 4>}, {pipeline_mode = #tpu.pipeline_mode<synchronous>, transform_indices = @transform_2, window_bounds = array<i64: 8, 1>}, {transform_indices = @transform_3, window_bounds = array<i64: 1, 8, 128>}]} {
    %c2_i32 = arith.constant 2 : i32
    %0 = arith.muli %arg1, %c2_i32 : i32
    %1 = arith.addi %0, %arg2 : i32
    %c0_i32 = arith.constant 0 : i32
    %2 = arith.cmpi eq, %arg2, %c0_i32 : i32
    %3 = arith.extui %2 : i1 to i32
    %c0_i32_0 = arith.constant 0 : i32
    %4 = arith.cmpi ne, %3, %c0_i32_0 : i32
    scf.if %4 {
      %c1024_i32_51 = arith.constant 1024 : i32
      %94 = arith.muli %1, %c1024_i32_51 : i32
      %95 = tpu.assume_multiple %94, 128 : i32
      %c0_i32_52 = arith.constant 0 : i32
      %c0_i32_53 = arith.constant 0 : i32
      %c0_i32_54 = arith.constant 0 : i32
      %96 = tpu.memref_slice %arg3[%arg0, %c0_i32_54, %95] : memref<2x4x2304xf32, #tpu.memory_space<any>> -> memref<1x4x1280xf32, #tpu.memory_space<any>>
      %97 = tpu.memref_squeeze %96 : memref<1x4x1280xf32, #tpu.memory_space<any>> -> memref<4x1280xf32, #tpu.memory_space<any>>
      %c0_i32_55 = arith.constant 0 : i32
      %c0_i32_56 = arith.constant 0 : i32
      %98 = tpu.memref_slice %arg7[%c0_i32_52, %c0_i32_55, %c0_i32_56] : memref<2x4x1280xf32, #tpu.memory_space<vmem>> -> memref<1x4x1280xf32, #tpu.memory_space<vmem>>
      %99 = tpu.memref_squeeze %98 : memref<1x4x1280xf32, #tpu.memory_space<vmem>> -> memref<4x1280xf32, #tpu.memory_space<vmem>>
      %100 = tpu.memref_slice %arg8[%c0_i32_53] : memref<2x!tpu.dma_semaphore, #tpu.memory_space<semaphore_mem>> -> memref<1x!tpu.dma_semaphore, #tpu.memory_space<semaphore_mem>>
      %101 = tpu.memref_squeeze %100 : memref<1x!tpu.dma_semaphore, #tpu.memory_space<semaphore_mem>> -> memref<!tpu.dma_semaphore, #tpu.memory_space<semaphore_mem>>
      tpu.enqueue_dma source(%97 : memref<4x1280xf32, #tpu.memory_space<any>>) target(%99 : memref<4x1280xf32, #tpu.memory_space<vmem>>) target_semaphore(%101 : memref<!tpu.dma_semaphore, #tpu.memory_space<semaphore_mem>>)
    } else {
    }
    %c2_i32_1 = arith.constant 2 : i32
    %c0_i32_2 = arith.constant 0 : i32
    %5 = arith.cmpi eq, %c2_i32_1, %c0_i32_2 : i32
    %c1_i32 = arith.constant 1 : i32
    %6 = arith.select %5, %c1_i32, %c2_i32_1 : i32
    %7 = arith.remsi %arg2, %6 : i32
    %c0_i32_3 = arith.constant 0 : i32
    %8 = arith.cmpi ne, %7, %c0_i32_3 : i32
    %c0_i32_4 = arith.constant 0 : i32
    %9 = arith.cmpi slt, %7, %c0_i32_4 : i32
    %c0_i32_5 = arith.constant 0 : i32
    %10 = arith.cmpi slt, %6, %c0_i32_5 : i32
    %11 = arith.xori %9, %10 : i1
    %12 = arith.andi %11, %8 : i1
    %13 = arith.addi %7, %6 : i32
    %14 = arith.select %12, %13, %7 : i32
    %c1024_i32 = arith.constant 1024 : i32
    %15 = arith.muli %1, %c1024_i32 : i32
    %16 = tpu.assume_multiple %15, 128 : i32
    %c0_i32_6 = arith.constant 0 : i32
    %17 = tpu.memref_slice %arg3[%arg0, %c0_i32_6, %16] : memref<2x4x2304xf32, #tpu.memory_space<any>> -> memref<1x4x1280xf32, #tpu.memory_space<any>>
    %18 = tpu.memref_squeeze %17 : memref<1x4x1280xf32, #tpu.memory_space<any>> -> memref<4x1280xf32, #tpu.memory_space<any>>
    %c0_i32_7 = arith.constant 0 : i32
    %c0_i32_8 = arith.constant 0 : i32
    %19 = tpu.memref_slice %arg7[%14, %c0_i32_7, %c0_i32_8] : memref<2x4x1280xf32, #tpu.memory_space<vmem>> -> memref<1x4x1280xf32, #tpu.memory_space<vmem>>
    %20 = tpu.memref_squeeze %19 : memref<1x4x1280xf32, #tpu.memory_space<vmem>> -> memref<4x1280xf32, #tpu.memory_space<vmem>>
    %21 = tpu.memref_slice %arg8[%14] : memref<2x!tpu.dma_semaphore, #tpu.memory_space<semaphore_mem>> -> memref<1x!tpu.dma_semaphore, #tpu.memory_space<semaphore_mem>>
    %22 = tpu.memref_squeeze %21 : memref<1x!tpu.dma_semaphore, #tpu.memory_space<semaphore_mem>> -> memref<!tpu.dma_semaphore, #tpu.memory_space<semaphore_mem>>
    tpu.wait_dma2 semaphore(%22 : memref<!tpu.dma_semaphore, #tpu.memory_space<semaphore_mem>>) src(%18 : memref<4x1280xf32, #tpu.memory_space<any>>) dst(%20 : memref<4x1280xf32, #tpu.memory_space<vmem>>)
    %c1_i32_9 = arith.constant 1 : i32
    %23 = arith.addi %arg2, %c1_i32_9 : i32
    %c2_i32_10 = arith.constant 2 : i32
    %24 = arith.cmpi slt, %23, %c2_i32_10 : i32
    %25 = arith.extui %24 : i1 to i32
    %c0_i32_11 = arith.constant 0 : i32
    %26 = arith.cmpi ne, %25, %c0_i32_11 : i32
    scf.if %26 {
      %c1_i32_51 = arith.constant 1 : i32
      %94 = arith.addi %1, %c1_i32_51 : i32
      %c1_i32_52 = arith.constant 1 : i32
      %95 = arith.subi %c1_i32_52, %14 : i32
      %c1024_i32_53 = arith.constant 1024 : i32
      %96 = arith.muli %94, %c1024_i32_53 : i32
      %97 = tpu.assume_multiple %96, 128 : i32
      %c0_i32_54 = arith.constant 0 : i32
      %98 = tpu.memref_slice %arg3[%arg0, %c0_i32_54, %97] : memref<2x4x2304xf32, #tpu.memory_space<any>> -> memref<1x4x1280xf32, #tpu.memory_space<any>>
      %99 = tpu.memref_squeeze %98 : memref<1x4x1280xf32, #tpu.memory_space<any>> -> memref<4x1280xf32, #tpu.memory_space<any>>
      %c0_i32_55 = arith.constant 0 : i32
      %c0_i32_56 = arith.constant 0 : i32
      %100 = tpu.memref_slice %arg7[%95, %c0_i32_55, %c0_i32_56] : memref<2x4x1280xf32, #tpu.memory_space<vmem>> -> memref<1x4x1280xf32, #tpu.memory_space<vmem>>
      %101 = tpu.memref_squeeze %100 : memref<1x4x1280xf32, #tpu.memory_space<vmem>> -> memref<4x1280xf32, #tpu.memory_space<vmem>>
      %102 = tpu.memref_slice %arg8[%95] : memref<2x!tpu.dma_semaphore, #tpu.memory_space<semaphore_mem>> -> memref<1x!tpu.dma_semaphore, #tpu.memory_space<semaphore_mem>>
      %103 = tpu.memref_squeeze %102 : memref<1x!tpu.dma_semaphore, #tpu.memory_space<semaphore_mem>> -> memref<!tpu.dma_semaphore, #tpu.memory_space<semaphore_mem>>
      tpu.enqueue_dma source(%99 : memref<4x1280xf32, #tpu.memory_space<any>>) target(%101 : memref<4x1280xf32, #tpu.memory_space<vmem>>) target_semaphore(%103 : memref<!tpu.dma_semaphore, #tpu.memory_space<semaphore_mem>>)
    } else {
    }
    %27 = arith.index_cast %14 : i32 to index
    %c0 = arith.constant 0 : index
    %c0_12 = arith.constant 0 : index
    %28 = vector.load %arg7[%27, %c0, %c0_12] : memref<2x4x1280xf32, #tpu.memory_space<vmem>>, vector<1x4x1280xf32>
    %29 = vector.shape_cast %28 : vector<1x4x1280xf32> to vector<4x1280xf32>
    %c0_13 = arith.constant 0 : index
    %c0_14 = arith.constant 0 : index
    %c0_15 = arith.constant 0 : index
    %30 = vector.load %arg4[%c0_13, %c0_14, %c0_15] : memref<9x8x4xf32, #tpu.memory_space<vmem>>, vector<1x8x4xf32>
    %31 = vector.shape_cast %30 : vector<1x8x4xf32> to vector<8x4xf32>
    %cst = arith.constant dense<0.000000e+00> : vector<8x1280xf32>
    %32 = tpu.matmul %31, %29, %cst {dimension_numbers = #tpu.dot_dimension_numbers<[1], [0], [0], [1], [0, 0, 1, 1], [], []>} : vector<8x4xf32>, vector<4x1280xf32>, vector<8x1280xf32> -> vector<8x1280xf32>
    %c1279_i32 = arith.constant 1279 : i32
    %33 = tpu.dynamic_rotate %29 by %c1279_i32 dim 1 : vector<4x1280xf32>, i32 -> vector<4x1280xf32>
    %c1 = arith.constant 1 : index
    %c0_16 = arith.constant 0 : index
    %c0_17 = arith.constant 0 : index
    %34 = vector.load %arg4[%c1, %c0_16, %c0_17] : memref<9x8x4xf32, #tpu.memory_space<vmem>>, vector<1x8x4xf32>
    %35 = vector.shape_cast %34 : vector<1x8x4xf32> to vector<8x4xf32>
    %cst_18 = arith.constant dense<0.000000e+00> : vector<8x1280xf32>
    %36 = tpu.matmul %35, %33, %cst_18 {dimension_numbers = #tpu.dot_dimension_numbers<[1], [0], [0], [1], [0, 0, 1, 1], [], []>} : vector<8x4xf32>, vector<4x1280xf32>, vector<8x1280xf32> -> vector<8x1280xf32>
    %37 = arith.addf %32, %36 : vector<8x1280xf32>
    %c1278_i32 = arith.constant 1278 : i32
    %38 = tpu.dynamic_rotate %29 by %c1278_i32 dim 1 : vector<4x1280xf32>, i32 -> vector<4x1280xf32>
    %c2 = arith.constant 2 : index
    %c0_19 = arith.constant 0 : index
    %c0_20 = arith.constant 0 : index
    %39 = vector.load %arg4[%c2, %c0_19, %c0_20] : memref<9x8x4xf32, #tpu.memory_space<vmem>>, vector<1x8x4xf32>
    %40 = vector.shape_cast %39 : vector<1x8x4xf32> to vector<8x4xf32>
    %cst_21 = arith.constant dense<0.000000e+00> : vector<8x1280xf32>
    %41 = tpu.matmul %40, %38, %cst_21 {dimension_numbers = #tpu.dot_dimension_numbers<[1], [0], [0], [1], [0, 0, 1, 1], [], []>} : vector<8x4xf32>, vector<4x1280xf32>, vector<8x1280xf32> -> vector<8x1280xf32>
    %42 = arith.addf %37, %41 : vector<8x1280xf32>
    %c1152_i32 = arith.constant 1152 : i32
    %43 = tpu.dynamic_rotate %29 by %c1152_i32 dim 1 : vector<4x1280xf32>, i32 -> vector<4x1280xf32>
    %c3 = arith.constant 3 : index
    %c0_22 = arith.constant 0 : index
    %c0_23 = arith.constant 0 : index
    %44 = vector.load %arg4[%c3, %c0_22, %c0_23] : memref<9x8x4xf32, #tpu.memory_space<vmem>>, vector<1x8x4xf32>
    %45 = vector.shape_cast %44 : vector<1x8x4xf32> to vector<8x4xf32>
    %cst_24 = arith.constant dense<0.000000e+00> : vector<8x1280xf32>
    %46 = tpu.matmul %45, %43, %cst_24 {dimension_numbers = #tpu.dot_dimension_numbers<[1], [0], [0], [1], [0, 0, 1, 1], [], []>} : vector<8x4xf32>, vector<4x1280xf32>, vector<8x1280xf32> -> vector<8x1280xf32>
    %47 = arith.addf %42, %46 : vector<8x1280xf32>
    %c1279_i32_25 = arith.constant 1279 : i32
    %48 = tpu.dynamic_rotate %43 by %c1279_i32_25 dim 1 : vector<4x1280xf32>, i32 -> vector<4x1280xf32>
    %c4 = arith.constant 4 : index
    %c0_26 = arith.constant 0 : index
    %c0_27 = arith.constant 0 : index
    %49 = vector.load %arg4[%c4, %c0_26, %c0_27] : memref<9x8x4xf32, #tpu.memory_space<vmem>>, vector<1x8x4xf32>
    %50 = vector.shape_cast %49 : vector<1x8x4xf32> to vector<8x4xf32>
    %cst_28 = arith.constant dense<0.000000e+00> : vector<8x1280xf32>
    %51 = tpu.matmul %50, %48, %cst_28 {dimension_numbers = #tpu.dot_dimension_numbers<[1], [0], [0], [1], [0, 0, 1, 1], [], []>} : vector<8x4xf32>, vector<4x1280xf32>, vector<8x1280xf32> -> vector<8x1280xf32>
    %52 = arith.addf %47, %51 : vector<8x1280xf32>
    %c1278_i32_29 = arith.constant 1278 : i32
    %53 = tpu.dynamic_rotate %43 by %c1278_i32_29 dim 1 : vector<4x1280xf32>, i32 -> vector<4x1280xf32>
    %c5 = arith.constant 5 : index
    %c0_30 = arith.constant 0 : index
    %c0_31 = arith.constant 0 : index
    %54 = vector.load %arg4[%c5, %c0_30, %c0_31] : memref<9x8x4xf32, #tpu.memory_space<vmem>>, vector<1x8x4xf32>
    %55 = vector.shape_cast %54 : vector<1x8x4xf32> to vector<8x4xf32>
    %cst_32 = arith.constant dense<0.000000e+00> : vector<8x1280xf32>
    %56 = tpu.matmul %55, %53, %cst_32 {dimension_numbers = #tpu.dot_dimension_numbers<[1], [0], [0], [1], [0, 0, 1, 1], [], []>} : vector<8x4xf32>, vector<4x1280xf32>, vector<8x1280xf32> -> vector<8x1280xf32>
    %57 = arith.addf %52, %56 : vector<8x1280xf32>
    %c1024_i32_33 = arith.constant 1024 : i32
    %58 = tpu.dynamic_rotate %29 by %c1024_i32_33 dim 1 : vector<4x1280xf32>, i32 -> vector<4x1280xf32>
    %c6 = arith.constant 6 : index
    %c0_34 = arith.constant 0 : index
    %c0_35 = arith.constant 0 : index
    %59 = vector.load %arg4[%c6, %c0_34, %c0_35] : memref<9x8x4xf32, #tpu.memory_space<vmem>>, vector<1x8x4xf32>
    %60 = vector.shape_cast %59 : vector<1x8x4xf32> to vector<8x4xf32>
    %cst_36 = arith.constant dense<0.000000e+00> : vector<8x1280xf32>
    %61 = tpu.matmul %60, %58, %cst_36 {dimension_numbers = #tpu.dot_dimension_numbers<[1], [0], [0], [1], [0, 0, 1, 1], [], []>} : vector<8x4xf32>, vector<4x1280xf32>, vector<8x1280xf32> -> vector<8x1280xf32>
    %62 = arith.addf %57, %61 : vector<8x1280xf32>
    %c1279_i32_37 = arith.constant 1279 : i32
    %63 = tpu.dynamic_rotate %58 by %c1279_i32_37 dim 1 : vector<4x1280xf32>, i32 -> vector<4x1280xf32>
    %c7 = arith.constant 7 : index
    %c0_38 = arith.constant 0 : index
    %c0_39 = arith.constant 0 : index
    %64 = vector.load %arg4[%c7, %c0_38, %c0_39] : memref<9x8x4xf32, #tpu.memory_space<vmem>>, vector<1x8x4xf32>
    %65 = vector.shape_cast %64 : vector<1x8x4xf32> to vector<8x4xf32>
    %cst_40 = arith.constant dense<0.000000e+00> : vector<8x1280xf32>
    %66 = tpu.matmul %65, %63, %cst_40 {dimension_numbers = #tpu.dot_dimension_numbers<[1], [0], [0], [1], [0, 0, 1, 1], [], []>} : vector<8x4xf32>, vector<4x1280xf32>, vector<8x1280xf32> -> vector<8x1280xf32>
    %67 = arith.addf %62, %66 : vector<8x1280xf32>
    %c1278_i32_41 = arith.constant 1278 : i32
    %68 = tpu.dynamic_rotate %58 by %c1278_i32_41 dim 1 : vector<4x1280xf32>, i32 -> vector<4x1280xf32>
    %c8 = arith.constant 8 : index
    %c0_42 = arith.constant 0 : index
    %c0_43 = arith.constant 0 : index
    %69 = vector.load %arg4[%c8, %c0_42, %c0_43] : memref<9x8x4xf32, #tpu.memory_space<vmem>>, vector<1x8x4xf32>
    %70 = vector.shape_cast %69 : vector<1x8x4xf32> to vector<8x4xf32>
    %cst_44 = arith.constant dense<0.000000e+00> : vector<8x1280xf32>
    %71 = tpu.matmul %70, %68, %cst_44 {dimension_numbers = #tpu.dot_dimension_numbers<[1], [0], [0], [1], [0, 0, 1, 1], [], []>} : vector<8x4xf32>, vector<4x1280xf32>, vector<8x1280xf32> -> vector<8x1280xf32>
    %72 = arith.addf %67, %71 : vector<8x1280xf32>
    %c0_45 = arith.constant 0 : index
    %c0_46 = arith.constant 0 : index
    %73 = vector.load %arg5[%c0_45, %c0_46] : memref<8x1xf32, #tpu.memory_space<vmem>>, vector<8x1xf32>
    %74 = vector.broadcast %73 : vector<8x1xf32> to vector<8x1280xf32>
    %75 = arith.addf %72, %74 : vector<8x1280xf32>
    %76 = arith.negf %75 : vector<8x1280xf32>
    %77 = math.exp %76 : vector<8x1280xf32>
    %cst_47 = arith.constant 1.000000e+00 : f32
    %78 = vector.broadcast %cst_47 : f32 to vector<8x1280xf32>
    %79 = arith.addf %78, %77 : vector<8x1280xf32>
    %80 = arith.divf %78, %79 : vector<8x1280xf32>
    %81 = arith.mulf %75, %80 : vector<8x1280xf32>
    %82 = vector.extract_strided_slice %81 {offsets = [0, 0], sizes = [8, 16], strides = [1, 1]} : vector<8x1280xf32> to vector<8x16xf32>
    %83 = vector.extract_strided_slice %81 {offsets = [0, 128], sizes = [8, 16], strides = [1, 1]} : vector<8x1280xf32> to vector<8x16xf32>
    %84 = vector.extract_strided_slice %81 {offsets = [0, 256], sizes = [8, 16], strides = [1, 1]} : vector<8x1280xf32> to vector<8x16xf32>
    %85 = vector.extract_strided_slice %81 {offsets = [0, 384], sizes = [8, 16], strides = [1, 1]} : vector<8x1280xf32> to vector<8x16xf32>
    %86 = vector.extract_strided_slice %81 {offsets = [0, 512], sizes = [8, 16], strides = [1, 1]} : vector<8x1280xf32> to vector<8x16xf32>
    %87 = vector.extract_strided_slice %81 {offsets = [0, 640], sizes = [8, 16], strides = [1, 1]} : vector<8x1280xf32> to vector<8x16xf32>
    %88 = vector.extract_strided_slice %81 {offsets = [0, 768], sizes = [8, 16], strides = [1, 1]} : vector<8x1280xf32> to vector<8x16xf32>
    %89 = vector.extract_strided_slice %81 {offsets = [0, 896], sizes = [8, 16], strides = [1, 1]} : vector<8x1280xf32> to vector<8x16xf32>
    %90 = tpu.concatenate %82, %83, %84, %85, %86, %87, %88, %89 in 1 : vector<8x16xf32>, vector<8x16xf32>, vector<8x16xf32>, vector<8x16xf32>, vector<8x16xf32>, vector<8x16xf32>, vector<8x16xf32>, vector<8x16xf32> -> vector<8x128xf32>
    %c0_48 = arith.constant 0 : index
    %c0_49 = arith.constant 0 : index
    %c0_50 = arith.constant 0 : index
    %91 = vector.load %arg6[%c0_48, %c0_49, %c0_50] : memref<1x8x128xf32, #tpu.memory_space<vmem>>, vector<1x8x128xf32>
    %92 = vector.shape_cast %91 : vector<1x8x128xf32> to vector<8x128xf32>
    %93 = vector.shape_cast %90 : vector<8x128xf32> to vector<1x8x128xf32>
    tpu.vector_store %arg6[%c0_48, %c0_49, %c0_50], %93 {strides = array<i32>} : memref<1x8x128xf32, #tpu.memory_space<vmem>>, vector<1x8x128xf32>,
    return
  }
  func.func @transform_1(%arg0: i32, %arg1: i32, %arg2: i32) -> (i32, i32, i32) {
    %c0_i32 = arith.constant 0 : i32
    %c0_i32_0 = arith.constant 0 : i32
    %c0_i32_1 = arith.constant 0 : i32
    %c0_i32_2 = arith.constant 0 : i32
    return %c0_i32, %c0_i32_0, %c0_i32_1 : i32, i32, i32
  }
  func.func @transform_2(%arg0: i32, %arg1: i32, %arg2: i32) -> (i32, i32) {
    %c0_i32 = arith.constant 0 : i32
    %c0_i32_0 = arith.constant 0 : i32
    %c0_i32_1 = arith.constant 0 : i32
    return %c0_i32, %c0_i32_0 : i32, i32
  }
  func.func @transform_3(%arg0: i32, %arg1: i32, %arg2: i32) -> (i32, i32, i32) {
    %c2_i32 = arith.constant 2 : i32
    %0 = arith.muli %arg1, %c2_i32 : i32
    %1 = arith.addi %0, %arg2 : i32
    %c0_i32 = arith.constant 0 : i32
    %c0_i32_0 = arith.constant 0 : i32
    return %arg0, %c0_i32, %1 : i32, i32, i32
  }
}

</mosaic_0001>

<bundles_post_ra>
// kernel: autoshape_forward.1
= control target key start
LH: loop header
LB: loop body
LE: loop exit
PB: predicated region body
PF: predicated region fallthrough
CT: control target
= control target key end

     0   :  { %s3745_s12 = smov 0   ;;  %s3747_s13 = smov 0   ;;  %s4229_s0 = inlined_call_operand.vmem [shape: f32[2,4,2304], index: 0, kind: input, shape index: {}]   ;;  %s4230_s1 = inlined_call_operand.vmem [shape: f32[9,8,4], index: 1, kind: input, shape index: {}]   ;;  %s4231_s2 = inlined_call_operand.vmem [shape: f32[8,1], index: 2, kind: input, shape index: {}]   ;;  %s4232_s3 = inlined_call_operand.vmem [shape: f32[2,8,256], index: 3, kind: output, shape index: {}]  }
   0x1   :  { %s3749_s14 = smov 0   ;;  %s3751_s15 = smov 0  }
   0x2   :  { %s3753_s16 = smov 0  }
   0x3 LB: > { %s25_s17 = sadd.s32 1, %s3704_s14  ;;  %s32_s18 = sadd.s32 1, %s3708_s15  ;;  %s3712_s16 = sphi %s3753_s16, %s13_s16   ;;  %s3708_s15 = sphi %s3751_s15, %s4236_s15   ;;  %s3704_s14 = sphi %s3749_s14, %s4235_s14   ;;  %s3700_s13 = sphi %s3747_s13, %s4234_s13   ;;  %s3696_s12 = sphi %s3745_s12, %s4233_s12  }
   0x4   : > { %p26_p0 = scmp.ge.s32.totalorder %s25_s17, 2  ;;  %p3373_p1 = scmp.ge.s32.totalorder %s3712_s16, 1 }
   0x5   : > { %p128_p2 = scmp.lt.s32.totalorder %s3712_s16, 5 }
   0x6   : > { %s4238_s17 = smov (%p26_p0, %s25_s17), 0  ;;  %s4240_s18 = smov (!%p26_p0, %s32_s18), %s3708_s15 }
   0x7   : > { %p129_p3 = pnand %p3373_p1, %p128_p2  ;;  %p34_p4 = scmp.ge.s32.totalorder %s4240_s18, 2 }
   0x8   : > { %p152_p5 = scmp.lt.s32.totalorder (!%p129_p3), %s3700_s13, 1  ;;  %p154_p6 = scmp.lt.s32.totalorder (!%p129_p3), %s3696_s12, 1 }
   0x9   : > { %s4242_s18 = smov (%p34_p4, %s4240_s18), 0  ;;  %132 = sbr.rel (%p129_p3) target bundleno = 633 (0x279), region = 28 }
   0xa   : > { %p3376_p7 = scmp.ne.s32.totalorder (!%p129_p3), %s3696_s12, 0 }
  0x10   : > { %s153_s19 = scalar_select %p152_p5, %s3700_s13, 1 }
  0x11   : > { %s155_s20 = scalar_select %p154_p6, %s3696_s12, 1 }
  0x12   : > { %s3374_s21 = sshll.u32 %s153_s19, 1  ;;  %167 = sbr.rel (%p3376_p7) target bundleno = 30 (0x1e), region = 32 }
  0x13   : > { %s157_s22 = sadd.s32 %s3374_s21, %s155_s20  ;;  %s3377_s27 = sshll.u32 (!%p3376_p7), %s3696_s12, 10 }
  0x14   : > { %s3375_s23 = sshll.u32 %s157_s22, 3  ;;  %s171_s28 = smul.u32 (!%p3376_p7), 18, %s3700_s13 }
  0x15   : > { %s3786_s26 = scalar_lea.vmem %s4232_s3, %s3375_s23  ;;  %s169_s29 = sshra.s32 (!%p3376_p7), %s3377_s27, 7 }
  0x16   : > { %s172_s30 = sadd.s32 (!%p3376_p7), %s171_s28, %s169_s29 }
  0x17   : > { %s3378_s4 = sshll.u32 (!%p3376_p7), %s172_s30, 2 }
  0x18   : > { %s174_s7 = scalar_lea.vmem (!%p3376_p7), %s4229_s0, %s3378_s4 }
  0x19   : > { %v207_v0 = vld [vmem:[%s174_s7] sm:$0xff]  ;;  %v209_v1 = vld [vmem:[%s174_s7 + $0x8] sm:$0xff]  ;;  %v211_v2 = vld [vmem:[%s174_s7 + $0x10] sm:$0xff] }
  0x1a   : > { %208 = vst [vmem:[#allocation2] sm:$0xff] %v207_v0  ;;  %210 = vst [vmem:[#allocation2 + $0x8] sm:$0xff] %v209_v1  ;;  %v213_v3 = vld [vmem:[%s174_s7 + $0x18] sm:$0xff]  ;;  %v215_v4 = vld [vmem:[%s174_s7 + $0x20] sm:$0xff] }
  0x1b   : > { %212 = vst [vmem:[#allocation2 + $0x10] sm:$0xff] %v211_v2  ;;  %214 = vst [vmem:[#allocation2 + $0x18] sm:$0xff] %v213_v3 }
  0x1c   : > { %216 = vst [vmem:[#allocation2 + $0x20] sm:$0xff] %v215_v4 }
  0x1d   : > { %224 = vsyncadd [#allocation3], 640 }
  0x1e PF: > { %p225_p8 = scmp.lt.s32.totalorder %s3696_s12, 0  ;;  %s226_s8 = ssub.s32 0, %s3696_s12 }
  0x1f   : > { %s3379_s9 = smin.u32 %s3696_s12, %s226_s8 }
  0x20   : > { %s228_s10 = sand.u32 1, %s3379_s9  }
  0x21   : > { %s229_s11 = ssub.s32 0, %s228_s10 }
  0x22   : > { %s4244_s11 = smov (!%p225_p8, %s229_s11), %s228_s10 }
  0x23   : > { %p3381_p9 = scmp.lt.s32.totalorder %s4244_s11, 0  ;;  %s235_s19 = sadd.s32 2, %s4244_s11 }
  0x25   : > { %s4246_s19 = smov (!%p3381_p9, %s235_s19), %s4244_s11 }
  0x26   : > { %s3515_s20 = smul.u32 40, %s4246_s19  ;;  %s241_s22 = scalar_lea.sflag [#allocation3], %s4246_s19 }
  0x28   : > { %s3800_s21 = scalar_lea.vmem [#allocation2], %s3515_s20 }
  0x29   : > { %3692 = dma.done.wait %s241_s22, 640 }
  0x2a   : > { %3693 = vsyncadd %s241_s22, 4294966656  ;;  %s246_s23 = sadd.s32 1, %s3696_s12 }
  0x2b   : > { %p3383_p10 = scmp.ge.s32.totalorder %s246_s23, 2 }
  0x2c   : > { %s252_s24 = ssub.s32 (!%p3383_p10), 1, %s4246_s19  ;;  %s3516_s25 = sshll.u32 (!%p3383_p10), %s3696_s12, 10 }
  0x2d   : > { %250 = sbr.rel (%p3383_p10) target bundleno = 56 (0x38), region = 70  ;;  %s3517_s27 = sadd.s32 (!%p3383_p10), 1024, %s3516_s25 }
  0x2e   : > { %s256_s28 = smul.u32 (!%p3383_p10), 18, %s3700_s13  ;;  %s254_s29 = sshra.s32 (!%p3383_p10), %s3517_s27, 7 }
  0x2f   : > { %s3518_s30 = smul.u32 (!%p3383_p10), 40, %s252_s24  ;;  %s263_s12 = scalar_lea.sflag (!%p3383_p10), [#allocation3], %s252_s24 }
  0x30   : > { %s257_s4 = sadd.s32 (!%p3383_p10), %s256_s28, %s254_s29 }
  0x31   : > { %s3385_s5 = sshll.u32 (!%p3383_p10), %s257_s4, 2  ;;  %s262_s9 = scalar_lea.vmem (!%p3383_p10), [#allocation2], %s3518_s30 }
  0x32   : > { %s259_s8 = scalar_lea.vmem (!%p3383_p10), %s4229_s0, %s3385_s5 }
  0x33   : > { %v296_v5 = vld [vmem:[%s259_s8] sm:$0xff] (!%p3383_p10)  ;;  %v298_v6 = vld [vmem:[%s259_s8 + $0x8] sm:$0xff] (!%p3383_p10)  ;;  %v300_v7 = vld [vmem:[%s259_s8 + $0x10] sm:$0xff] (!%p3383_p10) }
  0x34   : > { %297 = vst [vmem:[%s262_s9] sm:$0xff] %v296_v5  ;;  %299 = vst [vmem:[%s262_s9 + $0x8] sm:$0xff] %v298_v6  ;;  %v302_v8 = vld [vmem:[%s259_s8 + $0x18] sm:$0xff]  ;;  %v304_v9 = vld [vmem:[%s259_s8 + $0x20] sm:$0xff] }
  0x35   : > { %301 = vst [vmem:[%s262_s9 + $0x10] sm:$0xff] %v300_v7  ;;  %303 = vst [vmem:[%s262_s9 + $0x18] sm:$0xff] %v302_v8 }
  0x36   : > { %305 = vst [vmem:[%s262_s9 + $0x20] sm:$0xff] %v304_v9 }
  0x37   : > { %313 = vsyncadd %s263_s12, 640 }
  0x38 PF: > { %s3714_s13 = smov 127   ;;  %v3715_v15 = vmov 0.0   ;;  %s3716_s10 = smov 126   ;;  %v3136_v21 = vld [vmem:[%s4231_s2] sm:$0xff]  ;;  %v3717_v22 = vmov 0   ;;  %v351_v23 = vlaneseq  ;;  %vm368_vm1 = vcmask 1043456  }
  0x39   : > { %457 = vmatprep.mubr.f32.mxu0 %v3715_v15  ;;  %528 = vmatprep.mubr.f32.mxu1 %v3715_v15  ;;  %v3387_v30 = vld [vmem:[%s4230_s1 + $0x8] sm:$0xff]  ;;  %vm364_vm2 = vcmask 31744   ;;  %v319_v43 = vld [vmem:[%s4230_s1] sm:$0xff]  ;;  %v3412_v52 = vld [vmem:[%s4230_s1 + $0x10] sm:$0xff]  ;;  %s3719_s11 = smov 48   ;;  %s3720_s19 = smov 16  }
  0x3a   : > { %3634 = vset.pattern.permute.xlu0 %v3717_v22  ;;  %v3882_v25 = vand.u32 127, %v351_v23  ;;  %v3425_v62 = vld [vmem:[%s4230_s1 + $0x18] sm:$0xff]  ;;  %v3438_v1 = vld [vmem:[%s4230_s1 + $0x20] sm:$0xff]  ;;  %v3451_v3 = vld [vmem:[%s4230_s1 + $0x28] sm:$0xff]  ;;  %s3721_s20 = smov 80   ;;  %s3723_s22 = smov 112  }
  0x3b   : > { %v3464_v6 = vld [vmem:[%s4230_s1 + $0x30] sm:$0xff]  ;;  %v3477_v7 = vld [vmem:[%s4230_s1 + $0x38] sm:$0xff]  ;;  %v3490_v8 = vld [vmem:[%s4230_s1 + $0x40] sm:$0xff]  ;;  %s3724_s23 = smov 96   ;;  %vm3234_vm4 = vcmask 130048   ;;  %vm3236_vm5 = vcmask 261120  }
  0x3c   : > { %vm353_vm0 = vcmp.lt.s32.totalorder %v3882_v25, 127  ;;  %vm998_vm3 = vcmp.lt.s32.totalorder %v3882_v25, 126  ;;  %vm3238_vm6 = vcmask 392192   ;;  %vm3240_vm7 = vcmask 523264  }
  0x3d   : > { %vm3242_vm8 = vcmask 654336   ;;  %vm3244_vm9 = vcmask 785408   ;;  %vm3246_vm10 = vcmask 916480  }
  0x3f   : > { %v3811_v10 = vld [vmem:[%s3800_s21] sm:$0xff]  ;;  %v3814_v11 = vld [vmem:[%s3800_s21 + $0x8] sm:$0xff]  ;;  %v3827_v14 = vld [vmem:[%s3800_s21 + $0x10] sm:$0xff] }
  0x40   : > { %333 = vrot.lane.b32.xlu1 %v3811_v10, %s3714_s13  ;;  %v3820_v12 = vcombine.high %v3811_v10, %v3811_v10  ;;  %v3824_v13 = vcombine.high %v3814_v11, %v3814_v11  ;;  %v3837_v16 = vcombine.high %v3827_v14, %v3827_v14  ;;  %v3840_v17 = vld [vmem:[%s3800_s21 + $0x18] sm:$0xff]  ;;  %v3857_v19 = vld [vmem:[%s3800_s21 + $0x20] sm:$0xff]  ;;  %s3722_s21 = smov 64  }
  0x41   : > { %v3848_v18 = vcombine.high %v3840_v17, %v3840_v17  ;;  %v3871_v20 = vcombine.high %v3857_v19, %v3857_v19 }
  0x42   : > { %335 = vrot.lane.b32.xlu0 %v3820_v12, %s3714_s13 }
  0x44   : > { %339 = vrot.lane.b32.xlu1 %v3824_v13, %s3714_s13 }
  0x46   : > { %337 = vrot.lane.b32.xlu0 %v3814_v11, %s3714_s13 }
  0x48   : > { %343 = vrot.lane.b32.xlu1 %v3837_v16, %s3714_s13 }
  0x4a   : > { %341 = vrot.lane.b32.xlu0 %v3827_v14, %s3714_s13 }
  0x4c   : > { %347 = vrot.lane.b32.xlu1 %v3848_v18, %s3714_s13 }
  0x4e   : > { %345 = vrot.lane.b32.xlu0 %v3840_v17, %s3714_s13 }
  0x50   : > { %982 = vrot.lane.b32.xlu1 %v3820_v12, %s3716_s10 }
  0x52   : > { %349 = vrot.lane.b32.xlu0 %v3857_v19, %s3714_s13 }
  0x54   : > { %980 = vrot.lane.b32.xlu1 %v3811_v10, %s3716_s10 }
  0x56   : > { %984 = vrot.lane.b32.xlu0 %v3814_v11, %s3716_s10 }
  0x58   : > { %988 = vrot.lane.b32.xlu1 %v3827_v14, %s3716_s10 }
  0x5a   : > { %986 = vrot.lane.b32.xlu0 %v3824_v13, %s3716_s10 }
  0x5c   : > { %992 = vrot.lane.b32.xlu1 %v3840_v17, %s3716_s10 }
  0x5e   : > { %990 = vrot.lane.b32.xlu0 %v3837_v16, %s3716_s10 }
  0x60   : > { %996 = vrot.lane.b32.xlu1 %v3857_v19, %s3716_s10 }
  0x62   : > { %994 = vrot.lane.b32.xlu0 %v3848_v18, %s3716_s10 }
  0x64   : > { %1932 = vrot.lane.b32.xlu1 %v3871_v20, %s3716_s10  ;;  %s3718_s10 = smov 32  }
  0x66   : > { %1629 = vrot.lane.b32.xlu0 %v3871_v20, %s3714_s13 }
  0x6a   : > { %3139 = vperm.xlu0 %3634, %v3136_v21  }
  0xb2   : > { %v3880_v24 = vpop.permute.xlu1 %333 }
  0xb4   : > { %v336_v26 = vpop.permute.xlu0 %335 }
  0xb5   : > { %v361_v32 = vsel %vm353_vm0, %v3880_v24, %v336_v26 }
  0xb6   : > { %v340_v27 = vpop.permute.xlu1 %339 }
  0xb8   : > { %v338_v28 = vpop.permute.xlu0 %337 }
  0xb9   : > { %v3887_v29 = vsel %vm353_vm0, %v336_v26, %v338_v28  ;;  %v3908_v36 = vsel %vm353_vm0, %v338_v28, %v340_v27 }
  0xba   : > { %v344_v31 = vpop.permute.xlu1 %343  ;;  %3388 = vmatprep.subr.msk.mxu0 %vm368_vm1, %v3887_v29 }
  0xbb   : > { %3389 = vmatpush1.msk.msra.mxu0 %vm368_vm1, %v361_v32 }
  0xbc   : > { %v342_v33 = vpop.permute.xlu0 %341  ;;  %3390 = vmatmul.mubr.msk.f32.vlgmr.msra.gmra.mrb[0].mxu0 %vm364_vm2, %v3387_v30 }
  0xbd   : > { %v3901_v34 = vsel %vm353_vm0, %v340_v27, %v342_v33  ;;  %599 = vmatprep.mubr.f32.mxu0 %v3715_v15  ;;  %v3920_v39 = vsel %vm353_vm0, %v342_v33, %v344_v31 }
  0xbe   : > { %v348_v35 = vpop.permute.xlu1 %347  ;;  %3391 = vmatprep.subr.msk.mxu1 %vm368_vm1, %v3901_v34 }
  0xbf   : > { %3392 = vmatpush1.msk.msra.mxu1 %vm368_vm1, %v3908_v36 }
  0xc0   : > { %v346_v37 = vpop.permute.xlu0 %345  ;;  %3393 = vmatmul.mubr.msk.f32.vlgmr.msra.gmra.mrb[0].mxu1 %vm364_vm2, %v3387_v30 }
  0xc1   : > { %v3915_v38 = vsel %vm353_vm0, %v344_v31, %v346_v37  ;;  %670 = vmatprep.mubr.f32.mxu1 %v3715_v15  ;;  %v3944_v44 = vsel %vm353_vm0, %v346_v37, %v348_v35 }
  0xc2   : > { %v983_v40 = vpop.permute.xlu1 %982  ;;  %3394 = vmatprep.subr.msk.mxu0 %vm368_vm1, %v3915_v38 }
  0xc3   : > { %3395 = vmatpush1.msk.msra.mxu0 %vm368_vm1, %v3920_v39 }
  0xc4   : > { %3396 = vmatmul.mubr.msk.f32.vlgmr.msra.gmra.mrb[2].mxu0 %vm364_vm2, %v3387_v30  ;;  %v3927_v41 = vpop.permute.xlu0 %349  ;;  %3400 = vmatprep.subr.msk.mxu0 %vm368_vm1, %v3820_v12 }
  0xc5   : > { %v3934_v42 = vsel %vm353_vm0, %v348_v35, %v3927_v41  ;;  %3401 = vmatpush1.msk.msra.mxu0 %vm368_vm1, %v3811_v10  ;;  %760 = vmatprep.mubr.f32.mxu0 %v3715_v15 }
  0xc6   : > { %v3946_v45 = vpop.permute.xlu1 %980  ;;  %3397 = vmatprep.subr.msk.mxu1 %vm368_vm1, %v3934_v42  ;;  %3406 = vmatprep.subr.msk.mxu0 %vm368_vm1, %v3837_v16 }
  0xc7   : > { %3398 = vmatpush1.msk.msra.mxu1 %vm368_vm1, %v3944_v44  ;;  %v1006_v49 = vsel %vm998_vm3, %v3946_v45, %v983_v40 }
  0xc8   : > { %3399 = vmatmul.mubr.msk.f32.vlgmr.msra.gmra.mrb[2].mxu1 %vm364_vm2, %v3387_v30  ;;  %3402 = vmatmul.mubr.msk.f32.vlgmr.msra.gmra.mrb[0].mxu0 %vm364_vm2, %v319_v43  ;;  %v985_v46 = vpop.permute.xlu0 %984 }
  0xc9   : > { %v3959_v47 = vsel %vm998_vm3, %v983_v40, %v985_v46  ;;  %3407 = vmatpush1.msk.msra.mxu0 %vm368_vm1, %v3827_v14  ;;  %3403 = vmatprep.subr.msk.mxu1 %vm368_vm1, %v3824_v13 }
  0xca   : > { %v989_v48 = vpop.permute.xlu1 %988  ;;  %3413 = vmatprep.subr.msk.mxu0 %vm368_vm1, %v3959_v47  ;;  %3404 = vmatpush1.msk.msra.mxu1 %vm368_vm1, %v3814_v11 }
  0xcb   : > { %831 = vmatprep.mubr.f32.mxu1 %v3715_v15  ;;  %902 = vmatprep.mubr.f32.mxu0 %v3715_v15 }
  0xcc   : > { %3405 = vmatmul.mubr.msk.f32.vlgmr.msra.gmra.mrb[0].mxu1 %vm364_vm2, %v319_v43  ;;  %3408 = vmatmul.mubr.msk.f32.vlgmr.msra.gmra.mrb[2].mxu0 %vm364_vm2, %v319_v43  ;;  %v987_v50 = vpop.permute.xlu0 %986 }
  0xcd   : > { %3409 = vmatprep.subr.msk.mxu1 %vm368_vm1, %v3848_v18  ;;  %3414 = vmatpush1.msk.msra.mxu0 %vm368_vm1, %v1006_v49  ;;  %v3981_v51 = vsel %vm998_vm3, %v987_v50, %v989_v48  ;;  %v3994_v54 = vsel %vm998_vm3, %v985_v46, %v987_v50 }
  0xce   : > { %3410 = vmatpush1.msk.msra.mxu1 %vm368_vm1, %v3840_v17  ;;  %v993_v53 = vpop.permute.xlu1 %992  ;;  %973 = vmatprep.mubr.f32.mxu1 %v3715_v15 }
  0xcf   : > { %3416 = vmatprep.subr.msk.mxu1 %vm368_vm1, %v3981_v51  ;;  %1100 = vmatprep.mubr.f32.mxu0 %v3715_v15 }
  0xd0   : > { %3411 = vmatmul.mubr.msk.f32.vlgmr.msra.gmra.mrb[2].mxu1 %vm364_vm2, %v319_v43  ;;  %3415 = vmatmul.mubr.msk.f32.vlgmr.msra.gmra.mrb[0].mxu0 %vm364_vm2, %v3412_v52  ;;  %v991_v55 = vpop.permute.xlu0 %990 }
  0xd1   : > { %3417 = vmatpush1.msk.msra.mxu1 %vm368_vm1, %v3994_v54  ;;  %v4002_v56 = vsel %vm998_vm3, %v991_v55, %v993_v53  ;;  %v4006_v57 = vsel %vm998_vm3, %v989_v48, %v991_v55  ;;  %1171 = vmatprep.mubr.f32.mxu1 %v3715_v15 }
  0xd2   : > { %3419 = vmatprep.subr.msk.mxu0 %vm368_vm1, %v4002_v56  ;;  %1242 = vmatprep.mubr.f32.mxu0 %v3715_v15  ;;  %v997_v58 = vpop.permute.xlu1 %996 }
  0xd3   : > { %3420 = vmatpush1.msk.msra.mxu0 %vm368_vm1, %v4006_v57 }
  0xd4   : > { %3418 = vmatmul.mubr.msk.f32.vlgmr.msra.gmra.mrb[0].mxu1 %vm364_vm2, %v3412_v52  ;;  %3421 = vmatmul.mubr.msk.f32.vlgmr.msra.gmra.mrb[2].mxu0 %vm364_vm2, %v3412_v52  ;;  %v995_v59 = vpop.permute.xlu0 %994 }
  0xd5   : > { %v4018_v60 = vsel %vm998_vm3, %v995_v59, %v997_v58  ;;  %v4022_v61 = vsel %vm998_vm3, %v993_v53, %v995_v59  ;;  %3426 = vmatprep.subr.msk.mxu0 %vm368_vm1, %v3814_v11  ;;  %1313 = vmatprep.mubr.f32.mxu1 %v3715_v15 }
  0xd6   : > { %3422 = vmatprep.subr.msk.mxu1 %vm368_vm1, %v4018_v60  ;;  %3427 = vmatpush1.msk.msra.mxu0 %vm368_vm1, %v3820_v12  ;;  %v1933_v4 = vpop.permute.xlu1 %1932 }
  0xd7   : > { %3423 = vmatpush1.msk.msra.mxu1 %vm368_vm1, %v4022_v61  ;;  %1401 = vmatprep.mubr.f32.mxu0 %v3715_v15  ;;  %v1934_v5 = vsel %vm998_vm3, %v997_v58, %v1933_v4  ;;  %v2835_v9 = vsel %vm998_vm3, %v1933_v4, %v3946_v45 }
  0xd8   : > { %3432 = vmatprep.subr.msk.mxu0 %vm368_vm1, %v3840_v17  ;;  %3424 = vmatmul.mubr.msk.f32.vlgmr.msra.gmra.mrb[2].mxu1 %vm364_vm2, %v3412_v52  ;;  %v1630_v63 = vpop.permute.xlu0 %1629 }
  0xd9   : > { %3428 = vmatmul.mubr.msk.f32.vlgmr.msra.gmra.mrb[0].mxu0 %vm364_vm2, %v3425_v62  ;;  %v4044_v0 = vsel %vm353_vm0, %v1630_v63, %v3880_v24  ;;  %3429 = vmatprep.subr.msk.mxu1 %vm368_vm1, %v3827_v14  ;;  %v1631_v2 = vsel %vm353_vm0, %v3927_v41, %v1630_v63 }
  0xda   : > { %3433 = vmatpush1.msk.msra.mxu0 %vm368_vm1, %v3837_v16  ;;  %3430 = vmatpush1.msk.msra.mxu1 %vm368_vm1, %v3824_v13 }
  0xdb   : > { %3439 = vmatprep.subr.msk.mxu0 %vm368_vm1, %v3908_v36  ;;  %1472 = vmatprep.mubr.f32.mxu1 %v3715_v15 }
  0xdc   : > { %1543 = vmatprep.mubr.f32.mxu0 %v3715_v15  ;;  %3435 = vmatprep.subr.msk.mxu1 %vm368_vm1, %v3857_v19 }
  0xdd   : > { %3431 = vmatmul.mubr.msk.f32.vlgmr.msra.gmra.mrb[0].mxu1 %vm364_vm2, %v3425_v62  ;;  %3434 = vmatmul.mubr.msk.f32.vlgmr.msra.gmra.mrb[2].mxu0 %vm364_vm2, %v3425_v62 }
  0xde   : > { %3436 = vmatpush1.msk.msra.mxu1 %vm368_vm1, %v3848_v18  ;;  %3440 = vmatpush1.msk.msra.mxu0 %vm368_vm1, %v3887_v29 }
  0xdf   : > { %3442 = vmatprep.subr.msk.mxu1 %vm368_vm1, %v3920_v39  ;;  %3445 = vmatprep.subr.msk.mxu0 %vm368_vm1, %v3944_v44 }
  0xe0   : > { %1614 = vmatprep.mubr.f32.mxu1 %v3715_v15  ;;  %1704 = vmatprep.mubr.f32.mxu0 %v3715_v15 }
  0xe1   : > { %3437 = vmatmul.mubr.msk.f32.vlgmr.msra.gmra.mrb[2].mxu1 %vm364_vm2, %v3425_v62  ;;  %3441 = vmatmul.mubr.msk.f32.vlgmr.msra.gmra.mrb[0].mxu0 %vm364_vm2, %v3438_v1 }
  0xe2   : > { %3443 = vmatpush1.msk.msra.mxu1 %vm368_vm1, %v3901_v34  ;;  %3446 = vmatpush1.msk.msra.mxu0 %vm368_vm1, %v3915_v38 }
  0xe3   : > { %3448 = vmatprep.subr.msk.mxu1 %vm368_vm1, %v1631_v2  ;;  %3452 = vmatprep.subr.msk.mxu0 %vm368_vm1, %v3994_v54 }
  0xe4   : > { %1775 = vmatprep.mubr.f32.mxu1 %v3715_v15  ;;  %1846 = vmatprep.mubr.f32.mxu0 %v3715_v15 }
  0xe5   : > { %3444 = vmatmul.mubr.msk.f32.vlgmr.msra.gmra.mrb[0].mxu1 %vm364_vm2, %v3438_v1  ;;  %3447 = vmatmul.mubr.msk.f32.vlgmr.msra.gmra.mrb[2].mxu0 %vm364_vm2, %v3438_v1 }
  0xe6   : > { %3449 = vmatpush1.msk.msra.mxu1 %vm368_vm1, %v3934_v42  ;;  %3453 = vmatpush1.msk.msra.mxu0 %vm368_vm1, %v3959_v47 }
  0xe7   : > { %3455 = vmatprep.subr.msk.mxu1 %vm368_vm1, %v4006_v57  ;;  %3458 = vmatprep.subr.msk.mxu0 %vm368_vm1, %v4022_v61 }
  0xe8   : > { %1917 = vmatprep.mubr.f32.mxu1 %v3715_v15  ;;  %2007 = vmatprep.mubr.f32.mxu0 %v3715_v15 }
  0xe9   : > { %3450 = vmatmul.mubr.msk.f32.vlgmr.msra.gmra.mrb[2].mxu1 %vm364_vm2, %v3438_v1  ;;  %3454 = vmatmul.mubr.msk.f32.vlgmr.msra.gmra.mrb[0].mxu0 %vm364_vm2, %v3451_v3  ;;  %v4200_v10 = vpop.permute.xlu0 %3139 }
  0xea   : > { %3456 = vmatpush1.msk.msra.mxu1 %vm368_vm1, %v3981_v51  ;;  %3459 = vmatpush1.msk.msra.mxu0 %vm368_vm1, %v4002_v56 }
  0xeb   : > { %3461 = vmatprep.subr.msk.mxu1 %vm368_vm1, %v1934_v5  ;;  %2078 = vmatprep.mubr.f32.mxu1 %v3715_v15 }
  0xec   : > { %2149 = vmatprep.mubr.f32.mxu0 %v3715_v15  ;;  %3465 = vmatprep.subr.msk.mxu0 %vm368_vm1, %v3824_v13 }
  0xed   : > { %3457 = vmatmul.mubr.msk.f32.vlgmr.msra.gmra.mrb[0].mxu1 %vm364_vm2, %v3451_v3  ;;  %3460 = vmatmul.mubr.msk.f32.vlgmr.msra.gmra.mrb[2].mxu0 %vm364_vm2, %v3451_v3 }
  0xee   : > { %3462 = vmatpush1.msk.msra.mxu1 %vm368_vm1, %v4018_v60  ;;  %3466 = vmatpush1.msk.msra.mxu0 %vm368_vm1, %v3814_v11 }
  0xef   : > { %2220 = vmatprep.mubr.f32.mxu1 %v3715_v15  ;;  %2306 = vmatprep.mubr.f32.mxu0 %v3715_v15 }
  0xf0   : > { %3471 = vmatprep.subr.msk.mxu0 %vm368_vm1, %v3848_v18  ;;  %3468 = vmatprep.subr.msk.mxu1 %vm368_vm1, %v3837_v16 }
  0xf1   : > { %3463 = vmatmul.mubr.msk.f32.vlgmr.msra.gmra.mrb[2].mxu1 %vm364_vm2, %v3451_v3  ;;  %3467 = vmatmul.mubr.msk.f32.vlgmr.msra.gmra.mrb[0].mxu0 %vm364_vm2, %v3464_v6 }
  0xf2   : > { %3472 = vmatpush1.msk.msra.mxu0 %vm368_vm1, %v3840_v17  ;;  %3469 = vmatpush1.msk.msra.mxu1 %vm368_vm1, %v3827_v14 }
  0xf3   : > { %3478 = vmatprep.subr.msk.mxu0 %vm368_vm1, %v3901_v34  ;;  %2377 = vmatprep.mubr.f32.mxu1 %v3715_v15 }
  0xf4   : > { %2448 = vmatprep.mubr.f32.mxu0 %v3715_v15  ;;  %3474 = vmatprep.subr.msk.mxu1 %vm368_vm1, %v3871_v20 }
  0xf5   : > { %3470 = vmatmul.mubr.msk.f32.vlgmr.msra.gmra.mrb[0].mxu1 %vm364_vm2, %v3464_v6  ;;  %3473 = vmatmul.mubr.msk.f32.vlgmr.msra.gmra.mrb[2].mxu0 %vm364_vm2, %v3464_v6 }
  0xf6   : > { %3475 = vmatpush1.msk.msra.mxu1 %vm368_vm1, %v3857_v19  ;;  %3479 = vmatpush1.msk.msra.mxu0 %vm368_vm1, %v3908_v36 }
  0xf7   : > { %3481 = vmatprep.subr.msk.mxu1 %vm368_vm1, %v3915_v38  ;;  %3484 = vmatprep.subr.msk.mxu0 %vm368_vm1, %v3934_v42 }
  0xf8   : > { %2519 = vmatprep.mubr.f32.mxu1 %v3715_v15  ;;  %2607 = vmatprep.mubr.f32.mxu0 %v3715_v15 }
  0xf9   : > { %3476 = vmatmul.mubr.msk.f32.vlgmr.msra.gmra.mrb[2].mxu1 %vm364_vm2, %v3464_v6  ;;  %3480 = vmatmul.mubr.msk.f32.vlgmr.msra.gmra.mrb[0].mxu0 %vm364_vm2, %v3477_v7 }
  0xfa   : > { %3482 = vmatpush1.msk.msra.mxu1 %vm368_vm1, %v3920_v39  ;;  %3485 = vmatpush1.msk.msra.mxu0 %vm368_vm1, %v3944_v44 }
  0xfb   : > { %3487 = vmatprep.subr.msk.mxu1 %vm368_vm1, %v4044_v0  ;;  %3491 = vmatprep.subr.msk.mxu0 %vm368_vm1, %v3981_v51 }
  0xfc   : > { %2678 = vmatprep.mubr.f32.mxu1 %v3715_v15  ;;  %2749 = vmatprep.mubr.f32.mxu0 %v3715_v15 }
  0xfd   : > { %3483 = vmatmul.mubr.msk.f32.vlgmr.msra.gmra.mrb[0].mxu1 %vm364_vm2, %v3477_v7  ;;  %3486 = vmatmul.mubr.msk.f32.vlgmr.msra.gmra.mrb[2].mxu0 %vm364_vm2, %v3477_v7 }
  0xfe   : > { %3488 = vmatpush1.msk.msra.mxu1 %vm368_vm1, %v1631_v2  ;;  %3492 = vmatpush1.msk.msra.mxu0 %vm368_vm1, %v3994_v54 }
  0xff   : > { %3494 = vmatprep.subr.msk.mxu1 %vm368_vm1, %v4002_v56  ;;  %3497 = vmatprep.subr.msk.mxu0 %vm368_vm1, %v4018_v60 }
 0x100   : > { %2820 = vmatprep.mubr.f32.mxu1 %v3715_v15  ;;  %2908 = vmatprep.mubr.f32.mxu0 %v3715_v15 }
 0x101   : > { %3489 = vmatmul.mubr.msk.f32.vlgmr.msra.gmra.mrb[2].mxu1 %vm364_vm2, %v3477_v7  ;;  %3493 = vmatmul.mubr.msk.f32.vlgmr.msra.gmra.mrb[0].mxu0 %vm364_vm2, %v3490_v8 }
 0x102   : > { %3495 = vmatpush1.msk.msra.mxu1 %vm368_vm1, %v4006_v57  ;;  %3498 = vmatpush1.msk.msra.mxu0 %vm368_vm1, %v4022_v61 }
 0x103   : > { %3500 = vmatprep.subr.msk.mxu1 %vm368_vm1, %v2835_v9  ;;  %2979 = vmatprep.mubr.f32.mxu1 %v3715_v15 }
 0x104   : > { %3050 = vmatprep.mubr.f32.mxu0 %v3715_v15 }
 0x105   : > { %3496 = vmatmul.mubr.msk.f32.vlgmr.msra.gmra.mrb[0].mxu1 %vm364_vm2, %v3490_v8  ;;  %3499 = vmatmul.mubr.msk.f32.vlgmr.msra.gmra.mrb[2].mxu0 %vm364_vm2, %v3490_v8 }
 0x106   : > { %3501 = vmatpush1.msk.msra.mxu1 %vm368_vm1, %v1934_v5  ;;  %3121 = vmatprep.mubr.f32.mxu1 %v3715_v15 }
 0x109   : > { %3502 = vmatmul.mubr.msk.f32.vlgmr.msra.gmra.mrb[2].mxu1 %vm364_vm2, %v3490_v8 }
 0x1d4   : > { %v4202_v11 = vpop.f32.mrb[0].mxu0 }
 0x1d5   : > { %v2912_v12 = vpop.f32.mrb[1].mxu0  ;;  %v3142_v61 = vadd.f32 %v4200_v10, %v4202_v11 }
 0x1d6   : > { %v3143_v13 = vadd.f32 %v4200_v10, %v2912_v12 }
 0x1d7   : > { %v3503_v62 = vmul.f32 -1.442695, %v3142_v61 }
 0x1d8   : > { %v3504_v14 = vmul.f32 -1.442695, %v3143_v13  ;;  %v2981_v16 = vpop.f32.mrb[0].mxu1  ;;  %v3052_v17 = vpop.f32.mrb[2].mxu0 }
 0x1d9   : > { %v3144_v18 = vadd.f32 %v4200_v10, %v2981_v16  ;;  %v3146_v19 = vadd.f32 %v4200_v10, %v3052_v17  ;;  %v2983_v20 = vpop.f32.mrb[1].mxu1  ;;  %v3054_v21 = vpop.f32.mrb[3].mxu0 }
 0x1da   : > { %3640 = vpow2.f32 %v3504_v14  ;;  %v3145_v15 = vadd.f32 %v4200_v10, %v2983_v20  ;;  %v3147_v22 = vadd.f32 %v4200_v10, %v3054_v21 }
 0x1db   : > { %v3505_v23 = vmul.f32 -1.442695, %v3144_v18  ;;  %v3507_v24 = vmul.f32 -1.442695, %v3146_v19 }
 0x1dc   : > { %v3506_v25 = vmul.f32 -1.442695, %v3145_v15  ;;  %v3508_v26 = vmul.f32 -1.442695, %v3147_v22  ;;  %v3123_v27 = vpop.f32.mrb[2].mxu1 }
 0x1dd   : > { %3642 = vpow2.f32 %v3505_v23  ;;  %v3148_v28 = vadd.f32 %v4200_v10, %v3123_v27  ;;  %v3125_v29 = vpop.f32.mrb[3].mxu1 }
 0x1de   : > { %3644 = vpow2.f32 %v3507_v24  ;;  %v3149_v30 = vadd.f32 %v4200_v10, %v3125_v29 }
 0x1df   : > { %3646 = vpow2.f32 %v3506_v25  ;;  %v3509_v31 = vmul.f32 -1.442695, %v3148_v28 }
 0x1e0   : > { %3648 = vpow2.f32 %v3508_v26  ;;  %v3510_v32 = vmul.f32 -1.442695, %v3149_v30 }
 0x1e2   : > { %3650 = vpow2.f32 %v3510_v32 }
 0x1e3   : > { %3652 = vpow2.f32 %v3509_v31 }
 0x1e4   : > { %v3641_v33 = vpop.eup %3640 }
 0x1e5   : > { %v3175_v35 = vadd.f32 1.0, %v3641_v33 }
 0x1e7   : > { %v3643_v34 = vpop.eup %3642 }
 0x1e8   : > { %v3645_v36 = vpop.eup %3644  ;;  %v3176_v37 = vadd.f32 1.0, %v3643_v34 }
 0x1e9   : > { %v3647_v38 = vpop.eup %3646  ;;  %v3178_v43 = vadd.f32 1.0, %v3645_v36 }
 0x1ea   : > { %v3649_v39 = vpop.eup %3648  ;;  %3654 = vrcp.f32 %v3176_v37  ;;  %v3177_v40 = vadd.f32 1.0, %v3647_v38 }
 0x1eb   : > { %3656 = vrcp.f32 %v3175_v35  ;;  %v3179_v41 = vadd.f32 1.0, %v3649_v39 }
 0x1ec   : > { %v3651_v42 = vpop.eup %3650  ;;  %3658 = vrcp.f32 %v3177_v40 }
 0x1ed   : > { %v3653_v44 = vpop.eup %3652  ;;  %3660 = vrcp.f32 %v3179_v41  ;;  %v3181_v45 = vadd.f32 1.0, %v3651_v42 }
 0x1ee   : > { %3662 = vrcp.f32 %v3178_v43  ;;  %v3180_v46 = vadd.f32 1.0, %v3653_v44 }
 0x1ef   : > { %3664 = vrcp.f32 %v3181_v45 }
 0x1f0   : > { %3666 = vrcp.f32 %v3180_v46 }
 0x1f1   : > { %3668 = vpow2.f32 %v3503_v62 }
 0x1f4   : > { %v3655_v47 = vpop.eup %3654 }
 0x1f5   : > { %v3657_v48 = vpop.eup %3656  ;;  %v3200_v49 = vmul.f32 %v3655_v47, %v3144_v18 }
 0x1f6   : > { %v3659_v50 = vpop.eup %3658  ;;  %v3199_v53 = vmul.f32 %v3657_v48, %v3143_v13 }
 0x1f7   : > { %v3201_v51 = vmul.f32 %v3659_v50, %v3145_v15  ;;  %3211 = vrot.lane.b32.xlu1 %v3200_v49, %s3718_s10  ;;  %v3661_v52 = vpop.eup %3660 }
 0x1f8   : > { %v3663_v54 = vpop.eup %3662  ;;  %v3203_v55 = vmul.f32 %v3661_v52, %v3147_v22 }
 0x1f9   : > { %3215 = vrot.lane.b32.xlu0 %v3201_v51, %s3719_s11  ;;  %v3665_v56 = vpop.eup %3664  ;;  %v3202_v57 = vmul.f32 %v3663_v54, %v3146_v19 }
 0x1fa   : > { %v3667_v58 = vpop.eup %3666  ;;  %v3205_v59 = vmul.f32 %v3665_v56, %v3149_v30 }
 0x1fb   : > { %3207 = vrot.lane.b32.xlu1 %v3199_v53, %s3720_s19  ;;  %v3204_v60 = vmul.f32 %v3667_v58, %v3148_v28  ;;  %v3669_v63 = vpop.eup %3668 }
 0x1fc   : > { %v3174_v0 = vadd.f32 1.0, %v3669_v63 }
 0x1fd   : > { %3223 = vrot.lane.b32.xlu0 %v3203_v55, %s3721_s20 }
 0x1fe   : > { %3670 = vrcp.f32 %v3174_v0 }
 0x1ff   : > { %3219 = vrot.lane.b32.xlu1 %v3202_v57, %s3722_s21 }
 0x201   : > { %3231 = vrot.lane.b32.xlu0 %v3205_v59, %s3723_s22 }
 0x203   : > { %3227 = vrot.lane.b32.xlu1 %v3204_v60, %s3724_s23 }
 0x208   : > { %v3671_v1 = vpop.eup %3670 }
 0x209   : > { %v3198_v4 = vmul.f32 %v3671_v1, %v3142_v61 }
 0x269   : > { %v3212_v2 = vpop.permute.xlu1 %3211 }
 0x26b   : > { %v3216_v3 = vpop.permute.xlu0 %3215 }
 0x26d   : > { %v3208_v5 = vpop.permute.xlu1 %3207 }
 0x26e   : > { %v3235_v6 = vsel %vm3234_vm4, %v3198_v4, %v3208_v5 }
 0x26f   : > { %v3237_v7 = vsel %vm3236_vm5, %v3235_v6, %v3212_v2  ;;  %v3224_v8 = vpop.permute.xlu0 %3223 }
 0x270   : > { %v3239_v9 = vsel %vm3238_vm6, %v3237_v7, %v3216_v3 }
 0x271   : > { %v3220_v10 = vpop.permute.xlu1 %3219 }
 0x272   : > { %v3241_v11 = vsel %vm3240_vm7, %v3239_v9, %v3220_v10 }
 0x273   : > { %v3243_v13 = vsel %vm3242_vm8, %v3241_v11, %v3224_v8  ;;  %v3232_v14 = vpop.permute.xlu0 %3231 }
 0x275   : > { %v3228_v12 = vpop.permute.xlu1 %3227 }
 0x276   : > { %v3245_v16 = vsel %vm3244_vm9, %v3243_v13, %v3228_v12 }
 0x277   : > { %v3247_v17 = vsel %vm3246_vm10, %v3245_v16, %v3232_v14 }
 0x278   : > { %3248 = vst [vmem:[%s3786_s26] sm:$0xff] %v3247_v17 }
 0x279 PF: > { %s13_s16 = sadd.s32 1, %s3712_s16   ;;  %s4233_s12 = smov %s3704_s14 }
 0x27a   : > { %p10_p11 = scmp.ge.s32.totalorder %s13_s16, 6   ;;  %s4234_s13 = smov %s3708_s15 }
 0x27b   : > { %s4235_s14 = smov %s4238_s17  ;;  %s4236_s15 = smov %s4242_s18 }
 0x27c   :  { %12 = sbr.rel (!%p10_p11) target bundleno = 3 (0x3), region = 162 }
 0x283   :  { %3282 = vsyncmov [#allocation3] }
 0x286   :  { %s3283_s26 = vpop.sfrf %3282 }
 0x287   :  { %p3513_p12 = scmp.ne.s32.totalorder %s3283_s26, 0 }
 0x289   :  { %3287 = shalt.err (%p3513_p12)  }
 0x28a   :  { %3289 = vsyncmov [#allocation3 + $0x1] }
 0x28d   :  { %s3290_s24 = vpop.sfrf %3289 }
 0x28e   :  { %p3514_p13 = scmp.ne.s32.totalorder %s3290_s24, 0 }
 0x290   :  { %3294 = shalt.err (%p3514_p13)  }

</bundles_post_ra>
